<compile_context>
chip_gen: v6e
topology: v6e:2x2x1
jax: 0.10.0
libtpu: 0.0.40
codegen_flags: <defaults>
</compile_context>

<pallas_src>
import math

import jax
import jax.numpy as jnp
from jax.experimental import pallas as pl
from jax.experimental.pallas import tpu as pltpu

N = 128                                   # nodes per graph
G = 2                                     # number of graphs in the batch (grid axis)
C_IN = 32                                 # channel_in
C_OUT = 64                                # channel_out
C_MID = C_IN + (C_OUT - C_IN) // 2        # 48: hidden width of the GraphResBlock
PAD = 128                                 # lane padding for all channel dims
BN_EPS = 1e-5

W1_ROW, W2_ROW, W3_ROW = 0, C_IN, C_IN + PAD          # row offsets inside the weight slab
WSLAB_ROWS = C_IN + PAD + C_IN                        # 192


# ------------------------------------------------------------------ Pallas kernel
def graph_res_block_kernel(x_ref, adj_ref, w_ref, v_ref, out_ref):
    # x:   [N, C_IN]   f32 node features of one graph
    # adj: [N, N]      f32 normalized adjacency  D^-1/2 (A + I) D^-1/2
    # w:   [192, 128]  f32 weight slab: rows 0..31 W1 (lanes 0..47), rows 32..79 W2
    #                  (lanes 0..63, rows 80..159 zero), rows 160..191 W3 (lanes 0..63)
    # v:   [8, 128]    f32 per-channel vectors: scale1, shift1, scale2, shift2, bias3
    x = x_ref[...]
    a = adj_ref[...]

    w1 = w_ref[W1_ROW:W1_ROW + C_IN, :]          # [C_IN, 128]  (zero beyond col C_MID)
    w2 = w_ref[W2_ROW:W2_ROW + PAD, :]           # [128, 128]   (zero beyond row C_MID / col C_OUT)
    w3 = w_ref[W3_ROW:W3_ROW + C_IN, :]          # [C_IN, 128]  (zero beyond col C_OUT)

    scale1 = v_ref[0:1, :]
    shift1 = v_ref[1:2, :]
    scale2 = v_ref[2:3, :]
    shift2 = v_ref[3:4, :]
    bias3 = v_ref[4:5, :]

    # ---- shared aggregation (aggregate-first): ax = A_norm @ x, used by conv1 AND conv3 ----
    ax = jnp.dot(a, x, preferred_element_type=jnp.float32)          # [N, C_IN]

    # ---- conv1 -> (bias1 + BatchNorm1d eval) -> ReLU, folded into one per-channel FMA ------
    # TODO(synk): train-mode BatchNorm1d (batch statistics + running-stat updates) is not
    # implemented; this is inference mode with running statistics.
    h1 = jnp.dot(ax, w1, preferred_element_type=jnp.float32)        # [N, 128] (cols>=48 zero)
    h1 = jnp.maximum(h1 * scale1 + shift1, 0.0)

    # ---- conv2 (aggregate-first) -> bias2 + BN2 -> ReLU -------------------------------------
    ah1 = jnp.dot(a, h1, preferred_element_type=jnp.float32)        # [N, 128]
    h2 = jnp.dot(ah1, w2, preferred_element_type=jnp.float32)       # [N, 128] (cols>=64 zero)
    h2 = jnp.maximum(h2 * scale2 + shift2, 0.0)

    # ---- conv3 residual branch: (A@x) @ W3 + b3 ---------------------------------------------
    x3 = jnp.dot(ax, w3, preferred_element_type=jnp.float32)        # [N, 128] (cols>=64 zero)

    # Module does `h.relu() + conv3(x)`; h2 is already >= 0 so the extra relu is a no-op.
    out_ref[...] = (h2 + x3 + bias3).astype(out_ref.dtype)


def graph_res_block(x, norm_adj, wslab, vslab):
    """x: [G, N, C_IN] f32, norm_adj: [G, N, N] f32 -> [G, N, C_OUT] f32."""
    g, n, _ = x.shape
    out = pl.pallas_call(
        graph_res_block_kernel,
        out_shape=jax.ShapeDtypeStruct((g, n, PAD), jnp.float32),
        grid=(g,),
        in_specs=[
            pl.BlockSpec((None, n, C_IN), lambda i: (i, 0, 0)),
            pl.BlockSpec((None, n, n), lambda i: (i, 0, 0)),
            pl.BlockSpec((WSLAB_ROWS, PAD), lambda i: (0, 0)),
            pl.BlockSpec((8, PAD), lambda i: (0, 0)),
        ],
        out_specs=pl.BlockSpec((None, n, PAD), lambda i: (i, 0, 0)),
        compiler_params=pltpu.CompilerParams(dimension_semantics=("parallel",)),
    )(x, norm_adj, wslab, vslab)
    # Kernel keeps the channel axis lane-dense (128) for unmasked stores; slice back to C_OUT.
    return out[:, :, :C_OUT]


# ------------------------------------------------------------------ host-side prep
def build_norm_adj(src, dst, n):
    """Dense D^-1/2 (A + I) D^-1/2 matching PyG gcn_norm (flow source->target)."""
    adj = jnp.zeros((n, n), jnp.float32).at[dst, src].set(1.0)   # adj[i, j]=1 iff edge j->i
    a_hat = adj + jnp.eye(n, dtype=jnp.float32)                  # add self loops
    deg = jnp.sum(a_hat, axis=1)                                 # in-degree incl. self loop
    dinv = jax.lax.rsqrt(jnp.maximum(deg, 1.0))
    return a_hat * dinv[:, None] * dinv[None, :]


def init_params(key):
    ks = iter(jax.random.split(key, 20))

    def lin_w(fan_in, fan_out):
        return jax.random.normal(next(ks), (fan_in, fan_out), jnp.float32) / math.sqrt(fan_in)

    def lin_b(fan_out):
        return 0.05 * jax.random.normal(next(ks), (fan_out,), jnp.float32)

    def bn(width):
        gamma = 1.0 + 0.1 * jax.random.normal(next(ks), (width,), jnp.float32)
        beta = 0.1 * jax.random.normal(next(ks), (width,), jnp.float32)
        rmean = 0.1 * jax.random.normal(next(ks), (width,), jnp.float32)
        rvar = 0.5 + jax.random.uniform(next(ks), (width,), jnp.float32)
        return gamma, beta, rmean, rvar

    w1, b1 = lin_w(C_IN, C_MID), lin_b(C_MID)
    w2, b2 = lin_w(C_MID, C_OUT), lin_b(C_OUT)
    w3, b3 = lin_w(C_IN, C_OUT), lin_b(C_OUT)
    g1, be1, rm1, rv1 = bn(C_MID)
    g2, be2, rm2, rv2 = bn(C_OUT)
    return (w1, b1, w2, b2, w3, b3, g1, be1, rm1, rv1, g2, be2, rm2, rv2)


def pack_params(p):
    """Pack 14 parameter tensors into 2 lane-padded slabs; fold conv bias + eval BN."""
    (w1, b1, w2, b2, w3, b3, g1, be1, rm1, rv1, g2, be2, rm2, rv2) = p

    wslab = jnp.zeros((WSLAB_ROWS, PAD), jnp.float32)
    wslab = wslab.at[W1_ROW:W1_ROW + C_IN, 0:C_MID].set(w1)
    wslab = wslab.at[W2_ROW:W2_ROW + C_MID, 0:C_OUT].set(w2)
    wslab = wslab.at[W3_ROW:W3_ROW + C_IN, 0:C_OUT].set(w3)

    s1 = g1 * jax.lax.rsqrt(rv1 + BN_EPS)
    sh1 = (b1 - rm1) * s1 + be1
    s2 = g2 * jax.lax.rsqrt(rv2 + BN_EPS)
    sh2 = (b2 - rm2) * s2 + be2
    vslab = jnp.zeros((8, PAD), jnp.float32)
    vslab = vslab.at[0, 0:C_MID].set(s1)
    vslab = vslab.at[1, 0:C_MID].set(sh1)
    vslab = vslab.at[2, 0:C_OUT].set(s2)
    vslab = vslab.at[3, 0:C_OUT].set(sh2)
    vslab = vslab.at[4, 0:C_OUT].set(b3)
    return wslab, vslab


# ------------------------------------------------------------------ f32 reference
_HI = jax.lax.Precision.HIGHEST


def _gcn_conv_ref(x, norm_adj, w, b):
    return jnp.dot(norm_adj, jnp.dot(x, w, precision=_HI), precision=_HI) + b


def _bn_eval_ref(h, gamma, beta, rmean, rvar):
    return (h - rmean) * jax.lax.rsqrt(rvar + BN_EPS) * gamma + beta


def reference(x, norm_adj, params):
    (w1, b1, w2, b2, w3, b3, g1, be1, rm1, rv1, g2, be2, rm2, rv2) = params
    h = _gcn_conv_ref(x, norm_adj, w1, b1)
    h = jnp.maximum(_bn_eval_ref(h, g1, be1, rm1, rv1), 0.0)
    h = _gcn_conv_ref(h, norm_adj, w2, b2)
    h = jnp.maximum(_bn_eval_ref(h, g2, be2, rm2, rv2), 0.0)
    x3 = _gcn_conv_ref(x, norm_adj, w3, b3)
    return jnp.maximum(h, 0.0) + x3


def make_edge_index(skip_stride, skip_offset):
    """Deterministic edge_index (PyG convention: row 0 = src, row 1 = dst)."""
    src_list, dst_list = [], []
    for i in range(N):
        src_list += [i, (i + 1) % N]
        dst_list += [(i + 1) % N, i]
    for i in range(0, N, skip_stride):
        src_list.append(i)
        dst_list.append((i + skip_offset) % N)
    return jnp.asarray(src_list, jnp.int32), jnp.asarray(dst_list, jnp.int32)


# ------------------------------------------------------------------ main
if __name__ == "__main__":
    key = jax.random.PRNGKey(0)
    kx, kp = jax.random.split(key)

    x = jax.random.normal(kx, (G, N, C_IN), jnp.float32)

    # Two deterministic graphs: bidirectional ring + different skip edges each.
    adjs = []
    for g, (stride, off) in enumerate([(4, 5), (3, 9)]):
        src, dst = make_edge_index(stride, off)
        adjs.append(build_norm_adj(src, dst, N))
    norm_adj = jnp.stack(adjs, axis=0)                    # [G, N, N]

    params = init_params(kp)
    wslab, vslab = pack_params(params)

    out = graph_res_block(x, norm_adj, wslab, vslab)
    out = jax.block_until_ready(out)

    ref = jnp.stack([reference(x[g], norm_adj[g], params) for g in range(G)], axis=0)
    assert out.shape == (G, N, C_OUT)
    assert bool(jnp.all(jnp.isfinite(out)))
    # All matmul operands stay f32 (f32 accumulation); only reassociation differs vs reference.
    assert bool(jnp.allclose(out, ref, rtol=1e-2, atol=1e-2)), "mismatch vs reference"

    print("KERNEL_OK")
</pallas_src>

<mosaic_0001>
module attributes {stable_mosaic.version = 11 : i64} {
  func.func @graph_res_block_kernel(%arg0: i32, %arg1: memref<1x128x32xf32, #tpu.memory_space<vmem>>, %arg2: memref<1x128x128xf32, #tpu.memory_space<vmem>>, %arg3: memref<192x128xf32, #tpu.memory_space<vmem>>, %arg4: memref<8x128xf32, #tpu.memory_space<vmem>>, %arg5: memref<1x128x128xf32, #tpu.memory_space<vmem>>) attributes {dimension_semantics = [#tpu.dimension_semantics<parallel>], iteration_bounds = array<i64: 2>, scalar_prefetch = 0 : i64, scratch_operands = 0 : i64, tpu.core_type = #tpu.core_type<tc>, window_params = [{transform_indices = @transform_0, window_bounds = array<i64: 1, 128, 32>}, {transform_indices = @transform_1, window_bounds = array<i64: 1, 128, 128>}, {pipeline_mode = #tpu.pipeline_mode<synchronous>, transform_indices = @transform_2, window_bounds = array<i64: 192, 128>}, {pipeline_mode = #tpu.pipeline_mode<synchronous>, transform_indices = @transform_3, window_bounds = array<i64: 8, 128>}, {transform_indices = @transform_4, window_bounds = array<i64: 1, 128, 128>}]} {
    %c0 = arith.constant 0 : index
    %c0_0 = arith.constant 0 : index
    %c0_1 = arith.constant 0 : index
    %0 = vector.load %arg1[%c0, %c0_0, %c0_1] : memref<1x128x32xf32, #tpu.memory_space<vmem>>, vector<1x128x32xf32>
    %1 = vector.shape_cast %0 : vector<1x128x32xf32> to vector<128x32xf32>
    %c0_2 = arith.constant 0 : index
    %c0_3 = arith.constant 0 : index
    %c0_4 = arith.constant 0 : index
    %2 = vector.load %arg2[%c0_2, %c0_3, %c0_4] : memref<1x128x128xf32, #tpu.memory_space<vmem>>, vector<1x128x128xf32>
    %3 = vector.shape_cast %2 : vector<1x128x128xf32> to vector<128x128xf32>
    %c0_5 = arith.constant 0 : index
    %c0_6 = arith.constant 0 : index
    %4 = vector.load %arg3[%c0_5, %c0_6] : memref<192x128xf32, #tpu.memory_space<vmem>>, vector<32x128xf32>
    %c32 = arith.constant 32 : index
    %c0_7 = arith.constant 0 : index
    %5 = vector.load %arg3[%c32, %c0_7] : memref<192x128xf32, #tpu.memory_space<vmem>>, vector<128x128xf32>
    %c160 = arith.constant 160 : index
    %c0_8 = arith.constant 0 : index
    %6 = vector.load %arg3[%c160, %c0_8] : memref<192x128xf32, #tpu.memory_space<vmem>>, vector<32x128xf32>
    %c0_9 = arith.constant 0 : index
    %c0_10 = arith.constant 0 : index
    %7 = vector.load %arg4[%c0_9, %c0_10] : memref<8x128xf32, #tpu.memory_space<vmem>>, vector<1x128xf32>
    %c1 = arith.constant 1 : index
    %c0_11 = arith.constant 0 : index
    %8 = vector.load %arg4[%c1, %c0_11] : memref<8x128xf32, #tpu.memory_space<vmem>>, vector<1x128xf32>
    %c2 = arith.constant 2 : index
    %c0_12 = arith.constant 0 : index
    %9 = vector.load %arg4[%c2, %c0_12] : memref<8x128xf32, #tpu.memory_space<vmem>>, vector<1x128xf32>
    %c3 = arith.constant 3 : index
    %c0_13 = arith.constant 0 : index
    %10 = vector.load %arg4[%c3, %c0_13] : memref<8x128xf32, #tpu.memory_space<vmem>>, vector<1x128xf32>
    %c4 = arith.constant 4 : index
    %c0_14 = arith.constant 0 : index
    %11 = vector.load %arg4[%c4, %c0_14] : memref<8x128xf32, #tpu.memory_space<vmem>>, vector<1x128xf32>
    %cst = arith.constant dense<0.000000e+00> : vector<128x32xf32>
    %12 = tpu.matmul %3, %1, %cst {dimension_numbers = #tpu.dot_dimension_numbers<[1], [0], [0], [1], [0, 0, 1, 1], [], []>} : vector<128x128xf32>, vector<128x32xf32>, vector<128x32xf32> -> vector<128x32xf32>
    %cst_15 = arith.constant dense<0.000000e+00> : vector<128x128xf32>
    %13 = tpu.matmul %12, %4, %cst_15 {dimension_numbers = #tpu.dot_dimension_numbers<[1], [0], [0], [1], [0, 0, 1, 1], [], []>} : vector<128x32xf32>, vector<32x128xf32>, vector<128x128xf32> -> vector<128x128xf32>
    %14 = vector.broadcast %7 : vector<1x128xf32> to vector<128x128xf32>
    %15 = arith.mulf %13, %14 : vector<128x128xf32>
    %16 = vector.broadcast %8 : vector<1x128xf32> to vector<128x128xf32>
    %17 = arith.addf %15, %16 : vector<128x128xf32>
    %cst_16 = arith.constant 0.000000e+00 : f32
    %18 = vector.broadcast %cst_16 : f32 to vector<128x128xf32>
    %19 = arith.maximumf %17, %18 : vector<128x128xf32>
    %cst_17 = arith.constant dense<0.000000e+00> : vector<128x128xf32>
    %20 = tpu.matmul %3, %19, %cst_17 {dimension_numbers = #tpu.dot_dimension_numbers<[1], [0], [0], [1], [0, 0, 1, 1], [], []>} : vector<128x128xf32>, vector<128x128xf32>, vector<128x128xf32> -> vector<128x128xf32>
    %cst_18 = arith.constant dense<0.000000e+00> : vector<128x128xf32>
    %21 = tpu.matmul %20, %5, %cst_18 {dimension_numbers = #tpu.dot_dimension_numbers<[1], [0], [0], [1], [0, 0, 1, 1], [], []>} : vector<128x128xf32>, vector<128x128xf32>, vector<128x128xf32> -> vector<128x128xf32>
    %22 = vector.broadcast %9 : vector<1x128xf32> to vector<128x128xf32>
    %23 = arith.mulf %21, %22 : vector<128x128xf32>
    %24 = vector.broadcast %10 : vector<1x128xf32> to vector<128x128xf32>
    %25 = arith.addf %23, %24 : vector<128x128xf32>
    %cst_19 = arith.constant 0.000000e+00 : f32
    %26 = vector.broadcast %cst_19 : f32 to vector<128x128xf32>
    %27 = arith.maximumf %25, %26 : vector<128x128xf32>
    %cst_20 = arith.constant dense<0.000000e+00> : vector<128x128xf32>
    %28 = tpu.matmul %12, %6, %cst_20 {dimension_numbers = #tpu.dot_dimension_numbers<[1], [0], [0], [1], [0, 0, 1, 1], [], []>} : vector<128x32xf32>, vector<32x128xf32>, vector<128x128xf32> -> vector<128x128xf32>
    %29 = arith.addf %27, %28 : vector<128x128xf32>
    %30 = vector.broadcast %11 : vector<1x128xf32> to vector<128x128xf32>
    %31 = arith.addf %29, %30 : vector<128x128xf32>
    %c0_21 = arith.constant 0 : index
    %c0_22 = arith.constant 0 : index
    %c0_23 = arith.constant 0 : index
    %32 = vector.load %arg5[%c0_21, %c0_22, %c0_23] : memref<1x128x128xf32, #tpu.memory_space<vmem>>, vector<1x128x128xf32>
    %33 = vector.shape_cast %32 : vector<1x128x128xf32> to vector<128x128xf32>
    %34 = vector.shape_cast %31 : vector<128x128xf32> to vector<1x128x128xf32>
    tpu.vector_store %arg5[%c0_21, %c0_22, %c0_23], %34 {strides = array<i32>} : memref<1x128x128xf32, #tpu.memory_space<vmem>>, vector<1x128x128xf32>,
    return
  }
  func.func @transform_0(%arg0: i32) -> (i32, i32, i32) {
    %c0_i32 = arith.constant 0 : i32
    %c0_i32_0 = arith.constant 0 : i32
    %c0_i32_1 = arith.constant 0 : i32
    return %arg0, %c0_i32, %c0_i32_0 : i32, i32, i32
  }
  func.func @transform_1(%arg0: i32) -> (i32, i32, i32) {
    %c0_i32 = arith.constant 0 : i32
    %c0_i32_0 = arith.constant 0 : i32
    %c0_i32_1 = arith.constant 0 : i32
    return %arg0, %c0_i32, %c0_i32_0 : i32, i32, i32
  }
  func.func @transform_2(%arg0: i32) -> (i32, i32) {
    %c0_i32 = arith.constant 0 : i32
    %c0_i32_0 = arith.constant 0 : i32
    %c0_i32_1 = arith.constant 0 : i32
    return %c0_i32, %c0_i32_0 : i32, i32
  }
  func.func @transform_3(%arg0: i32) -> (i32, i32) {
    %c0_i32 = arith.constant 0 : i32
    %c0_i32_0 = arith.constant 0 : i32
    %c0_i32_1 = arith.constant 0 : i32
    return %c0_i32, %c0_i32_0 : i32, i32
  }
  func.func @transform_4(%arg0: i32) -> (i32, i32, i32) {
    %c0_i32 = arith.constant 0 : i32
    %c0_i32_0 = arith.constant 0 : i32
    %c0_i32_1 = arith.constant 0 : i32
    return %arg0, %c0_i32, %c0_i32_0 : i32, i32, i32
  }
}

</mosaic_0001>

<bundles_post_ra>
// kernel: tpu_custom_call.1
= control target key start
LH: loop header
LB: loop body
LE: loop exit
PB: predicated region body
PF: predicated region fallthrough
CT: control target
= control target key end

     0   :  { %9 = vsyncpa [#allocation3], 0  ;;  %s2410_s0 = inlined_call_operand.vmem [shape: f32[2,128,32], index: 0, kind: input, shape index: {}]   ;;  %s2411_s1 = inlined_call_operand.vmem [shape: f32[2,128,128], index: 1, kind: input, shape index: {}]   ;;  %s2412_s2 = inlined_call_operand.hbm [shape: f32[192,128], index: 2, kind: input, shape index: {}]   ;;  %s2413_s3 = inlined_call_operand.vmem [shape: f32[8,128], index: 3, kind: input, shape index: {}]   ;;  %s2414_s4 = inlined_call_operand.hbm [shape: f32[2,128,128], index: 4, kind: output, shape index: {}]  }
   0x1   :  { %10 = vsyncpa [#allocation4], 0 }
   0x2   :  { %12 = vsyncpa [#allocation4 + $0x1], 0  ;;  %s1939_s15 = smov 0   ;;  %s1941_s16 = smov 0  }
   0x3   :  { %s1943_s17 = smov 0   ;;  %s1945_s18 = smov 0  }
   0x4 LB: > { %s1960_s19 = sadd.s32 4294967295, %s1906_s18   ;;  %s1330_s20 = sadd.s32 4294967294, %s1906_s18   ;;  %s1906_s18 = sphi %s1945_s18, %s2422_s18   ;;  %s1902_s17 = sphi %s1943_s17, %s2421_s17   ;;  %s1898_s16 = sphi %s1941_s16, %s2420_s16   ;;  %s1894_s15 = sphi %s1939_s15, %s2419_s15  }
   0x5   : > { %s1964_s21 = sadd.s32 1, %s1906_s18   ;;  %s119_s22 = sadd.s32 1, %s1902_s17 }
   0x6   : > { %s116_s23 = ssub.s32 %s1906_s18, %s1964_s21  ;;  %p129_p0 = scmp.ne.s32.totalorder %s1902_s17, %s1898_s16 }
   0x7   : > { %p117_p1 = scmp.eq.s32.totalorder %s116_s23, 0  ;;  %p130_p2 = scmp.eq.s32.totalorder %s1960_s19, 1 }
   0x8   : > { %p135_p3 = scmp.ne.s32.totalorder %s1898_s16, %s1894_s15  ;;  %p136_p4 = scmp.eq.s32.totalorder %s1330_s20, 1 }
   0x9   : > { %s1975_s24 = scalar_select %p117_p1, %s1902_s17, %s119_s22  }
   0xa   : > { %p1977_p5 = por %p130_p2, %p129_p0  ;;  %p1981_p6 = por %p136_p4, %p135_p3 }
   0xb   : > { %p1331_p7 = scmp.ge.s32.totalorder %s1906_s18, 1  ;;  %p143_p8 = scmp.lt.s32.totalorder %s1906_s18, 3 }
   0xc   : > { %s2416_s26 = scalar_select %p1981_p6, 1, 0 }
   0xd   : > { %p1776_p9 = scmp.eq.s32.totalorder %s1960_s19, 0  ;;  %p1988_p10 = pnand %p1331_p7, %p143_p8 }
   0xe   : > { %s1908_s28 = smov [#allocation2]  }
   0xf   : > { %s155_s29 = sshll.u32 %s1908_s28, 4  ;;  %p1768_p11 = pneg %p1988_p10  ;;  %s156_s29 = int_to_ptr.vmem [resolvable:$true] %s155_s29 }
  0x10   : > { %s1827_s30 = scalar_lea.vmem %s156_s29, 3072  ;;  %p1835_p3 = scmp.lt.s32.totalorder %s156_s29, %s156_s29 }
  0x11   : > { %p1769_p12 = pnand %p1776_p9, %p1768_p11  ;;  %p1828_p0 = scmp.ne.s32.totalorder %s156_s29, %s1827_s30 }
  0x12   : > { %p1836_p4 = scmp.lt.s32.totalorder %s1827_s30, %s1827_s30 }
  0x13   : > { %p1818_p13 = pneg %p1769_p12 }
  0x14   : > { %p1837_p6 = por %p1836_p4, %p1835_p3 }
  0x15   : > { %p1830_p1 = pnand %p1828_p0, %p1818_p13 }
  0x17   : > { %p1831_p2 = pneg %p1830_p1 }
  0x19   : > { %p1838_p7 = pnand %p1837_p6, %p1831_p2 }
  0x1b   : > { %1841 = shalt.err (!%p1838_p7)
}
  0x1c   : > { %s1909_s5 = smov 128   ;;  %s1910_s6 = smov 8  }
  0x1d   : > { %1771 = dma.hbm_to_vmem [thread:$0]  (!%p1769_p12), %s2412_s2, 3072, %s156_s29, [#allocation3], %s1909_s5, %s1909_s5, %s1910_s6  }
  0x1e   : > { %190 = sbr.rel (%p1988_p10) target bundleno = 973 (0x3cd), region = 36 }
  0x23   : > { %1885 = dma.done.wait (%p1776_p9), [#allocation3], 3072  }
  0x24   : > { %1887 = vsyncadd (%p1776_p9), [#allocation3], 4294964224  ;;  %p221_p8 = scmp.lt.s32.totalorder %s1960_s19, 1  ;;  %v266_v8 = vld [vmem:[#allocation2 + $0x18] sm:$0xff]  ;;  %v265_v9 = vld [vmem:[#allocation2 + $0x10] sm:$0xff]  ;;  %vm437_vm0 = vcmask 261120  }
  0x25   : > { %1578 = vmatprep.subr.mxu1 %v266_v8  ;;  %v264_v34 = vld [vmem:[#allocation2 + $0x8] sm:$0xff]  ;;  %v263_v35 = vld [vmem:[#allocation2] sm:$0xff]  ;;  %v282_v52 = vld [vmem:[#allocation2 + $0x98] sm:$0xff]  ;;  %s218_s8 = sand.u32 1, %s1898_s16   ;;  %s1911_s28 = smov [#allocation5]  }
  0x26   : > { %s222_s9 = scalar_select %p221_p8, %s1960_s19, 1  ;;  %1579 = vmatpush3.msra.mxu1 %v266_v8  ;;  %v281_v53 = vld [vmem:[#allocation2 + $0x90] sm:$0xff]  ;;  %v280_v54 = vld [vmem:[#allocation2 + $0x88] sm:$0xff]  ;;  %v279_v55 = vld [vmem:[#allocation2 + $0x80] sm:$0xff] }
  0x27   : > { %1580 = vmatprep.subr.mxu1 %v265_v9  ;;  %v278_v57 = vld [vmem:[#allocation2 + $0x78] sm:$0xff]  ;;  %v277_v59 = vld [vmem:[#allocation2 + $0x70] sm:$0xff]  ;;  %v276_v61 = vld [vmem:[#allocation2 + $0x68] sm:$0xff]  ;;  %s1846_s29 = sshll.u32 %s1911_s28, 4  ;;  %s1847_s29 = int_to_ptr.vmem [resolvable:$false] %s1846_s29 }
  0x28   : > { %s1383_s10 = sshll.u32 %s222_s9, 7  ;;  %1581 = vmatpush3.msra.mxu1 %v265_v9  ;;  %v275_v63 = vld [vmem:[#allocation2 + $0x60] sm:$0xff]  ;;  %v270_v9 = vld [vmem:[#allocation2 + $0x38] sm:$0xff]  ;;  %s1336_s9 = sshll.u32 %s218_s8, 7 }
  0x29   : > { %s2010_s13 = scalar_lea.vmem %s2410_s0, %s1383_s10  ;;  %s2018_s22 = scalar_lea.vmem %s2411_s1, %s1383_s10  ;;  %1582 = vmatprep.subr.mxu1 %v264_v34 }
  0x2a   : > { %v246_v0 = vld [vmem:[%s2010_s13 + $0x78] sm:$0xff]  ;;  %v245_v1 = vld [vmem:[%s2010_s13 + $0x70] sm:$0xff]  ;;  %v244_v2 = vld [vmem:[%s2010_s13 + $0x68] sm:$0xff]  ;;  %1583 = vmatpush3.msra.mxu1 %v264_v34  ;;  %s2301_s12 = scalar_lea.vmem [#allocation5], %s1336_s9  ;;  %s1848_s30 = scalar_lea.vmem %s1847_s29, 4096 }
  0x2b   : > { %1522 = vmatprep.subr.mxu0 %v246_v0  ;;  %v243_v3 = vld [vmem:[%s2010_s13 + $0x60] sm:$0xff]  ;;  %v242_v5 = vld [vmem:[%s2010_s13 + $0x58] sm:$0xff]  ;;  %v241_v6 = vld [vmem:[%s2010_s13 + $0x50] sm:$0xff]  ;;  %1584 = vmatprep.subr.mxu1 %v263_v35  ;;  %s1244_s14 = sshll.u32 %s2301_s12, 4  ;;  %s2362_s14 = int_to_ptr.vmem [resolvable:$true] %s1244_s14 }
  0x2c   : > { %1523 = vmatpush3.msra.mxu0 %v246_v0  ;;  %v2022_v4 = vld [vmem:[%s2018_s22] sm:$0xff]  ;;  %v240_v7 = vld [vmem:[%s2010_s13 + $0x48] sm:$0xff]  ;;  %v238_v11 = vld [vmem:[%s2010_s13 + $0x38] sm:$0xff]  ;;  %1585 = vmatpush3.msra.mxu1 %v263_v35  ;;  %s1842_s27 = scalar_lea.vmem %s2362_s14, 2048  ;;  %p1849_p11 = scmp.lt.s32.totalorder %s2362_s14, %s1847_s29 }
  0x2d   : > { %1524 = vmatprep.subr.mxu0 %v245_v1  ;;  %1554 = vmatprep.mubr.f32.mxu0 %v2022_v4  ;;  %v239_v10 = vld [vmem:[%s2010_s13 + $0x40] sm:$0xff]  ;;  %v237_v12 = vld [vmem:[%s2010_s13 + $0x30] sm:$0xff]  ;;  %v236_v13 = vld [vmem:[%s2010_s13 + $0x28] sm:$0xff]  ;;  %p1843_p6 = scmp.ne.s32.totalorder %s2362_s14, %s1842_s27  ;;  %p1850_p12 = scmp.lt.s32.totalorder %s1848_s30, %s1842_s27 }
  0x2e   : > { %1525 = vmatpush3.msra.mxu0 %v245_v1  ;;  %v235_v14 = vld [vmem:[%s2010_s13 + $0x20] sm:$0xff]  ;;  %v234_v15 = vld [vmem:[%s2010_s13 + $0x18] sm:$0xff]  ;;  %v233_v16 = vld [vmem:[%s2010_s13 + $0x10] sm:$0xff] }
  0x2f   : > { %1526 = vmatprep.subr.mxu0 %v244_v2  ;;  %v232_v17 = vld [vmem:[%s2010_s13 + $0x8] sm:$0xff]  ;;  %v231_v18 = vld [vmem:[%s2010_s13] sm:$0xff]  ;;  %v2041_v20 = vld [vmem:[%s2018_s22 + $0x10] sm:$0xff]  ;;  %s1385_s13 = sshll.u32 %s1960_s19, 11  ;;  %s2370_s19 = scalar_lea.sflag [#allocation4], %s218_s8 }
  0x30   : > { %1527 = vmatpush3.msra.mxu0 %v244_v2  ;;  %v2038_v19 = vld [vmem:[%s2018_s22 + $0x8] sm:$0xff]  ;;  %v2046_v21 = vld [vmem:[%s2018_s22 + $0x18] sm:$0xff]  ;;  %v2049_v22 = vld [vmem:[%s2018_s22 + $0x20] sm:$0xff]  ;;  %s2360_s23 = scalar_lea.hbm %s2414_s4, %s1385_s13  ;;  %p1844_p9 = pnand %p1843_p6, %p1977_p5 }
  0x31   : > { %1528 = vmatprep.subr.mxu0 %v243_v3  ;;  %v2054_v23 = vld [vmem:[%s2018_s22 + $0x28] sm:$0xff]  ;;  %v2057_v24 = vld [vmem:[%s2018_s22 + $0x30] sm:$0xff]  ;;  %v2062_v25 = vld [vmem:[%s2018_s22 + $0x38] sm:$0xff]  ;;  %p1851_p13 = por %p1850_p12, %p1849_p11 }
  0x32   : > { %1529 = vmatpush3.msra.mxu0 %v243_v3  ;;  %v2065_v26 = vld [vmem:[%s2018_s22 + $0x40] sm:$0xff]  ;;  %v2070_v27 = vld [vmem:[%s2018_s22 + $0x48] sm:$0xff]  ;;  %v2073_v28 = vld [vmem:[%s2018_s22 + $0x50] sm:$0xff]  ;;  %p1845_p10 = pneg %p1844_p9 }
  0x33   : > { %1530 = vmatprep.subr.mxu0 %v242_v5  ;;  %v2078_v29 = vld [vmem:[%s2018_s22 + $0x58] sm:$0xff]  ;;  %v2081_v30 = vld [vmem:[%s2018_s22 + $0x60] sm:$0xff]  ;;  %v2086_v31 = vld [vmem:[%s2018_s22 + $0x68] sm:$0xff] }
  0x34   : > { %1531 = vmatpush3.msra.mxu0 %v242_v5  ;;  %v2089_v32 = vld [vmem:[%s2018_s22 + $0x70] sm:$0xff]  ;;  %v2094_v33 = vld [vmem:[%s2018_s22 + $0x78] sm:$0xff]  ;;  %v272_v5 = vld [vmem:[#allocation2 + $0x48] sm:$0xff]  ;;  %p1852_p0 = pnand %p1851_p13, %p1845_p10 }
  0x35   : > { %1532 = vmatprep.subr.mxu0 %v241_v6  ;;  %v274_v1 = vld [vmem:[#allocation2 + $0x58] sm:$0xff]  ;;  %v273_v3 = vld [vmem:[#allocation2 + $0x50] sm:$0xff]  ;;  %v2184_v35 = vld [vmem:[%s2413_s3 + $0x1] ss:$0 sm:$0xff] }
  0x36   : > { %1533 = vmatpush3.msra.mxu0 %v241_v6 }
  0x37   : > { %1534 = vmatprep.subr.mxu0 %v240_v7 }
  0x38   : > { %1535 = vmatpush3.msra.mxu0 %v240_v7  ;;  %v271_v7 = vld [vmem:[#allocation2 + $0x40] sm:$0xff] }
  0x39   : > { %1536 = vmatprep.subr.mxu0 %v239_v10 }
  0x3a   : > { %1537 = vmatpush3.msra.mxu0 %v239_v10 }
  0x3b   : > { %1538 = vmatprep.subr.mxu0 %v238_v11 }
  0x3c   : > { %1539 = vmatpush3.msra.mxu0 %v238_v11  ;;  %v269_v11 = vld [vmem:[#allocation2 + $0x30] sm:$0xff] }
  0x3d   : > { %1540 = vmatprep.subr.mxu0 %v237_v12 }
  0x3e   : > { %1541 = vmatpush3.msra.mxu0 %v237_v12 }
  0x3f   : > { %1542 = vmatprep.subr.mxu0 %v236_v13 }
  0x40   : > { %1543 = vmatpush3.msra.mxu0 %v236_v13 }
  0x41   : > { %1544 = vmatprep.subr.mxu0 %v235_v14 }
  0x42   : > { %1545 = vmatpush3.msra.mxu0 %v235_v14 }
  0x43   : > { %1546 = vmatprep.subr.mxu0 %v234_v15 }
  0x44   : > { %1547 = vmatpush3.msra.mxu0 %v234_v15 }
  0x45   : > { %1548 = vmatprep.subr.mxu0 %v233_v16 }
  0x46   : > { %1549 = vmatpush3.msra.mxu0 %v233_v16  ;;  %v2177_v16 = vld [vmem:[%s2413_s3] ss:$0 sm:$0xff] }
  0x47   : > { %1550 = vmatprep.subr.mxu0 %v232_v17 }
  0x48   : > { %1551 = vmatpush3.msra.mxu0 %v232_v17 }
  0x49   : > { %1552 = vmatprep.subr.mxu0 %v231_v18 }
  0x4a   : > { %1553 = vmatpush3.msra.mxu0 %v231_v18 }
  0x4b   : > { %1555 = vmatmul.mubr.f32.vlgmr.msra.gmra.mxu0 %v2038_v19  ;;  %1666 = vmatprep.subr.mxu0 %v282_v52 }
  0x4c   : > { %1557 = vmatprep.mubr.f32.mxu0 %v2041_v20  ;;  %1667 = vmatpush3.msra.mxu0 %v282_v52 }
  0x4d   : > { %1668 = vmatprep.subr.mxu0 %v281_v53 }
  0x4e   : > { %1669 = vmatpush3.msra.mxu0 %v281_v53 }
  0x4f   : > { %1558 = vmatmul.mubr.f32.gmra.mxu0 %v2046_v21  ;;  %1670 = vmatprep.subr.mxu0 %v280_v54 }
  0x50   : > { %1560 = vmatprep.mubr.f32.mxu0 %v2049_v22  ;;  %1671 = vmatpush3.msra.mxu0 %v280_v54 }
  0x51   : > { %1672 = vmatprep.subr.mxu0 %v279_v55 }
  0x52   : > { %1673 = vmatpush3.msra.mxu0 %v279_v55 }
  0x53   : > { %1561 = vmatmul.mubr.f32.gmra.mxu0 %v2054_v23  ;;  %1674 = vmatprep.subr.mxu0 %v278_v57 }
  0x54   : > { %1563 = vmatprep.mubr.f32.mxu0 %v2057_v24  ;;  %1675 = vmatpush3.msra.mxu0 %v278_v57 }
  0x55   : > { %1676 = vmatprep.subr.mxu0 %v277_v59 }
  0x56   : > { %1677 = vmatpush3.msra.mxu0 %v277_v59 }
  0x57   : > { %1564 = vmatmul.mubr.f32.gmra.mxu0 %v2062_v25  ;;  %1678 = vmatprep.subr.mxu0 %v276_v61 }
  0x58   : > { %1566 = vmatprep.mubr.f32.mxu0 %v2065_v26  ;;  %1679 = vmatpush3.msra.mxu0 %v276_v61 }
  0x59   : > { %1680 = vmatprep.subr.mxu0 %v275_v63 }
  0x5a   : > { %1681 = vmatpush3.msra.mxu0 %v275_v63 }
  0x5b   : > { %1567 = vmatmul.mubr.f32.gmra.mxu0 %v2070_v27  ;;  %1682 = vmatprep.subr.mxu0 %v274_v1 }
  0x5c   : > { %1569 = vmatprep.mubr.f32.mxu0 %v2073_v28  ;;  %1683 = vmatpush3.msra.mxu0 %v274_v1 }
  0x5d   : > { %1684 = vmatprep.subr.mxu0 %v273_v3 }
  0x5e   : > { %1685 = vmatpush3.msra.mxu0 %v273_v3 }
  0x5f   : > { %1570 = vmatmul.mubr.f32.gmra.mxu0 %v2078_v29  ;;  %1686 = vmatprep.subr.mxu0 %v272_v5 }
  0x60   : > { %1572 = vmatprep.mubr.f32.mxu0 %v2081_v30  ;;  %1687 = vmatpush3.msra.mxu0 %v272_v5 }
  0x61   : > { %1688 = vmatprep.subr.mxu0 %v271_v7 }
  0x62   : > { %1689 = vmatpush3.msra.mxu0 %v271_v7 }
  0x63   : > { %1573 = vmatmul.mubr.f32.gmra.mxu0 %v2086_v31  ;;  %1690 = vmatprep.subr.mxu0 %v270_v9 }
  0x64   : > { %1575 = vmatprep.mubr.f32.mxu0 %v2089_v32  ;;  %1691 = vmatpush3.msra.mxu0 %v270_v9 }
  0x65   : > { %1692 = vmatprep.subr.mxu0 %v269_v11 }
  0x66   : > { %1693 = vmatpush3.msra.mxu0 %v269_v11 }
  0x67   : > { %1576 = vmatmul.mubr.f32.gmra.mxu0 %v2094_v33 }
 0x10b   : > { %v2097_v36 = vpop.f32.mrf.mxu0 }
 0x10d   : > { %v2099_v37 = vpop.f32.mrf.mxu0 }
 0x10e   : > { %1586 = vmatprep.mubr.msk.f32.mxu1 %vm437_vm0, %v2099_v37 }
 0x10f   : > { %v2103_v38 = vpop.f32.mrf.mxu0  ;;  %1587 = vmatmul.mubr.msk.f32.vlgmr.msra.gmra.mxu1 %vm437_vm0, %v2097_v36 }
 0x111   : > { %v2107_v39 = vpop.f32.mrf.mxu0 }
 0x112   : > { %1589 = vmatprep.mubr.msk.f32.mxu1 %vm437_vm0, %v2107_v39 }
 0x113   : > { %v2111_v40 = vpop.f32.mrf.mxu0  ;;  %1590 = vmatmul.mubr.msk.f32.gmra.mxu1 %vm437_vm0, %v2103_v38 }
 0x115   : > { %v2115_v41 = vpop.f32.mrf.mxu0 }
 0x116   : > { %1592 = vmatprep.mubr.msk.f32.mxu1 %vm437_vm0, %v2115_v41 }
 0x117   : > { %v2119_v42 = vpop.f32.mrf.mxu0  ;;  %1593 = vmatmul.mubr.msk.f32.gmra.mxu1 %vm437_vm0, %v2111_v40 }
 0x119   : > { %v2123_v43 = vpop.f32.mrf.mxu0 }
 0x11a   : > { %1595 = vmatprep.mubr.msk.f32.mxu1 %vm437_vm0, %v2123_v43 }
 0x11b   : > { %v2127_v44 = vpop.f32.mrf.mxu0  ;;  %1596 = vmatmul.mubr.msk.f32.gmra.mxu1 %vm437_vm0, %v2119_v42 }
 0x11d   : > { %v2131_v45 = vpop.f32.mrf.mxu0 }
 0x11e   : > { %1598 = vmatprep.mubr.msk.f32.mxu1 %vm437_vm0, %v2131_v45 }
 0x11f   : > { %v2135_v46 = vpop.f32.mrf.mxu0  ;;  %1599 = vmatmul.mubr.msk.f32.gmra.mxu1 %vm437_vm0, %v2127_v44 }
 0x121   : > { %v2139_v47 = vpop.f32.mrf.mxu0 }
 0x122   : > { %1601 = vmatprep.mubr.msk.f32.mxu1 %vm437_vm0, %v2139_v47 }
 0x123   : > { %v2143_v48 = vpop.f32.mrf.mxu0  ;;  %1602 = vmatmul.mubr.msk.f32.gmra.mxu1 %vm437_vm0, %v2135_v46 }
 0x125   : > { %v2147_v49 = vpop.f32.mrf.mxu0 }
 0x126   : > { %1604 = vmatprep.mubr.msk.f32.mxu1 %vm437_vm0, %v2147_v49 }
 0x127   : > { %v2151_v50 = vpop.f32.mrf.mxu0  ;;  %1605 = vmatmul.mubr.msk.f32.gmra.mxu1 %vm437_vm0, %v2143_v48 }
 0x129   : > { %v2155_v51 = vpop.f32.mrf.mxu0 }
 0x12a   : > { %1607 = vmatprep.mubr.msk.f32.mxu1 %vm437_vm0, %v2155_v51 }
 0x12b   : > { %1608 = vmatmul.mubr.msk.f32.gmra.mxu1 %vm437_vm0, %v2151_v50 }
 0x12c   : > { %1642 = vmatprep.mubr.f32.mxu1 %v2022_v4 }
 0x1cf   : > { %v2162_v56 = vpop.f32.mrf.mxu1 }
 0x1d1   : > { %v2164_v58 = vpop.f32.mrf.mxu1 }
 0x1d3   : > { %v2166_v60 = vpop.f32.mrf.mxu1 }
 0x1d5   : > { %v2168_v62 = vpop.f32.mrf.mxu1 }
 0x1d7   : > { %v2170_v0 = vpop.f32.mrf.mxu1 }
 0x1d9   : > { %v2172_v2 = vpop.f32.mrf.mxu1 }
 0x1db   : > { %v1597_v4 = vpop.f32.mrf.mxu1 }
 0x1dd   : > { %v582_v6 = vpop.f32.mrf.mxu1 }
 0x1df   : > { %v1600_v8 = vpop.f32.mrf.mxu1 }
 0x1e0   : > { %v644_v7 = vmul.f32 %v1600_v8, %v2177_v16  ;;  %v641_v8 = vmul.f32 %v2177_v16, %v582_v6  ;;  %v638_v6 = vmul.f32 %v2166_v60, %v2177_v16  ;;  %v635_v60 = vmul.f32 %v2177_v16, %v2164_v58  ;;  %v286_v58 = vld [vmem:[#allocation2 + $0xb8] sm:$0xff] }
 0x1e1   : > { %v592_v10 = vpop.f32.mrf.mxu1 }
 0x1e3   : > { %v1603_v12 = vpop.f32.mrf.mxu1 }
 0x1e4   : > { %v646_v57 = vmul.f32 %v1603_v12, %v2177_v16  ;;  %v643_v12 = vmul.f32 %v2177_v16, %v592_v10  ;;  %v640_v10 = vmul.f32 %v2170_v0, %v2177_v16  ;;  %v637_v0 = vmul.f32 %v2177_v16, %v2168_v62 }
 0x1e5   : > { %v602_v13 = vpop.f32.mrf.mxu1 }
 0x1e6   : > { %v645_v1 = vmul.f32 %v2177_v16, %v602_v13  ;;  %v666_v9 = vadd.f32 %v2184_v35, %v646_v57  ;;  %v642_v13 = vmul.f32 %v1597_v4, %v2177_v16  ;;  %v639_v4 = vmul.f32 %v2177_v16, %v2172_v2 }
 0x1e7   : > { %v1606_v14 = vpop.f32.mrf.mxu1  ;;  %v636_v2 = vmul.f32 %v2162_v56, %v2177_v16  ;;  %v655_v56 = vadd.f32 %v2184_v35, %v635_v60 }
 0x1e8   : > { %v648_v18 = vmul.f32 %v1606_v14, %v2177_v16  ;;  %v665_v14 = vadd.f32 %v2184_v35, %v645_v1 }
 0x1e9   : > { %v612_v15 = vpop.f32.mrf.mxu1  ;;  %v656_v62 = vadd.f32 %v2184_v35, %v636_v2 }
 0x1ea   : > { %v647_v53 = vmul.f32 %v2177_v16, %v612_v15  ;;  %v668_v59 = vadd.f32 %v2184_v35, %v648_v18  ;;  %v682_v18 = vmax.f32 %v666_v9, 0.0 }
 0x1eb   : > { %v1609_v17 = vpop.f32.mrf.mxu1 }
 0x1ec   : > { %v650_v34 = vmul.f32 %v1609_v17, %v2177_v16  ;;  %v667_v3 = vadd.f32 %v2184_v35, %v647_v53  ;;  %v684_v11 = vmax.f32 %v668_v59, 0.0  ;;  %v664_v17 = vadd.f32 %v2184_v35, %v644_v7 }
 0x1ed   : > { %v622_v52 = vpop.f32.mrf.mxu1  ;;  %v662_v53 = vadd.f32 %v2184_v35, %v642_v13  ;;  %v660_v59 = vadd.f32 %v2184_v35, %v640_v10  ;;  %v657_v7 = vadd.f32 %v2184_v35, %v637_v0  ;;  %v283_v13 = vld [vmem:[#allocation2 + $0xa0] sm:$0xff] }
 0x1ee   : > { %v670_v54 = vadd.f32 %v2184_v35, %v650_v34  ;;  %v649_v55 = vmul.f32 %v2177_v16, %v622_v52  ;;  %v683_v15 = vmax.f32 %v667_v3, 0.0  ;;  %v663_v34 = vadd.f32 %v2184_v35, %v643_v12  ;;  %v285_v16 = vld [vmem:[#allocation2 + $0xb0] sm:$0xff] }
 0x1ef   : > { %v681_v52 = vmax.f32 %v665_v14, 0.0  ;;  %v658_v3 = vadd.f32 %v2184_v35, %v638_v6  ;;  %v673_v12 = vmax.f32 %v657_v7, 0.0  ;;  %v672_v14 = vmax.f32 %v656_v62, 0.0 }
 0x1f0   : > { %v686_v61 = vmax.f32 %v670_v54, 0.0  ;;  %v669_v63 = vadd.f32 %v2184_v35, %v649_v55  ;;  %v680_v54 = vmax.f32 %v664_v17, 0.0  ;;  %v661_v55 = vadd.f32 %v2184_v35, %v641_v8 }
 0x1f1   : > { %v679_v57 = vmax.f32 %v663_v34, 0.0 }
 0x1f2   : > { %v685_v5 = vmax.f32 %v669_v63, 0.0  ;;  %1610 = vmatprep.subr.mxu1 %v686_v61  ;;  %v659_v63 = vadd.f32 %v2184_v35, %v639_v4  ;;  %v677_v1 = vmax.f32 %v661_v55, 0.0  ;;  %v284_v35 = vld [vmem:[#allocation2 + $0xa8] sm:$0xff] }
 0x1f3   : > { %1611 = vmatpush3.msra.mxu1 %v686_v61  ;;  %v678_v61 = vmax.f32 %v662_v53, 0.0 }
 0x1f4   : > { %1612 = vmatprep.subr.mxu1 %v685_v5  ;;  %v675_v9 = vmax.f32 %v659_v63, 0.0 }
 0x1f5   : > { %1613 = vmatpush3.msra.mxu1 %v685_v5  ;;  %v676_v5 = vmax.f32 %v660_v59, 0.0 }
 0x1f6   : > { %1614 = vmatprep.subr.mxu1 %v684_v11 }
 0x1f7   : > { %1615 = vmatpush3.msra.mxu1 %v684_v11  ;;  %v674_v11 = vmax.f32 %v658_v3, 0.0 }
 0x1f8   : > { %1616 = vmatprep.subr.mxu1 %v683_v15 }
 0x1f9   : > { %1617 = vmatpush3.msra.mxu1 %v683_v15  ;;  %v671_v15 = vmax.f32 %v655_v56, 0.0 }
 0x1fa   : > { %1618 = vmatprep.subr.mxu1 %v682_v18 }
 0x1fb   : > { %1619 = vmatpush3.msra.mxu1 %v682_v18 }
 0x1fc   : > { %1620 = vmatprep.subr.mxu1 %v681_v52 }
 0x1fd   : > { %1621 = vmatpush3.msra.mxu1 %v681_v52 }
 0x1fe   : > { %1622 = vmatprep.subr.mxu1 %v680_v54 }
 0x1ff   : > { %1623 = vmatpush3.msra.mxu1 %v680_v54  ;;  %v2294_v54 = vld [vmem:[%s2413_s3 + $0x4] ss:$0 sm:$0xff] }
 0x200   : > { %1624 = vmatprep.subr.mxu1 %v679_v57 }
 0x201   : > { %1625 = vmatpush3.msra.mxu1 %v679_v57 }
 0x202   : > { %1626 = vmatprep.subr.mxu1 %v678_v61 }
 0x203   : > { %1627 = vmatpush3.msra.mxu1 %v678_v61 }
 0x204   : > { %1628 = vmatprep.subr.mxu1 %v677_v1 }
 0x205   : > { %1629 = vmatpush3.msra.mxu1 %v677_v1 }
 0x206   : > { %1630 = vmatprep.subr.mxu1 %v676_v5 }
 0x207   : > { %1631 = vmatpush3.msra.mxu1 %v676_v5 }
 0x208   : > { %1632 = vmatprep.subr.mxu1 %v675_v9 }
 0x209   : > { %1633 = vmatpush3.msra.mxu1 %v675_v9 }
 0x20a   : > { %1634 = vmatprep.subr.mxu1 %v674_v11 }
 0x20b   : > { %1635 = vmatpush3.msra.mxu1 %v674_v11 }
 0x20c   : > { %1636 = vmatprep.subr.mxu1 %v673_v12 }
 0x20d   : > { %1637 = vmatpush3.msra.mxu1 %v673_v12 }
 0x20e   : > { %1638 = vmatprep.subr.mxu1 %v672_v14 }
 0x20f   : > { %1639 = vmatpush3.msra.mxu1 %v672_v14 }
 0x210   : > { %1640 = vmatprep.subr.mxu1 %v671_v15 }
 0x211   : > { %1641 = vmatpush3.msra.mxu1 %v671_v15 }
 0x212   : > { %1643 = vmatmul.mubr.f32.vlgmr.msra.gmra.mxu1 %v2038_v19  ;;  %1754 = vmatprep.subr.mxu1 %v286_v58  ;;  %v268_v19 = vld [vmem:[#allocation2 + $0x28] sm:$0xff] }
 0x213   : > { %1645 = vmatprep.mubr.f32.mxu1 %v2041_v20  ;;  %1758 = vmatpush3.msra.mxu1 %v286_v58  ;;  %v267_v20 = vld [vmem:[#allocation2 + $0x20] sm:$0xff] }
 0x214   : > { %1755 = vmatprep.subr.mxu1 %v285_v16  ;;  %1694 = vmatprep.subr.mxu0 %v268_v19 }
 0x215   : > { %1759 = vmatpush3.msra.mxu1 %v285_v16  ;;  %1695 = vmatpush3.msra.mxu0 %v268_v19 }
 0x216   : > { %1646 = vmatmul.mubr.f32.gmra.mxu1 %v2046_v21  ;;  %1756 = vmatprep.subr.mxu1 %v284_v35 }
 0x217   : > { %1648 = vmatprep.mubr.f32.mxu1 %v2049_v22  ;;  %1760 = vmatpush3.msra.mxu1 %v284_v35 }
 0x218   : > { %1757 = vmatprep.subr.mxu1 %v283_v13  ;;  %1696 = vmatprep.subr.mxu0 %v267_v20 }
 0x219   : > { %1761 = vmatpush3.msra.mxu1 %v283_v13  ;;  %1697 = vmatpush3.msra.mxu0 %v267_v20 }
 0x21a   : > { %1649 = vmatmul.mubr.f32.gmra.mxu1 %v2054_v23  ;;  %1722 = vmatprep.subr.mxu0 %v286_v58 }
 0x21b   : > { %1651 = vmatprep.mubr.f32.mxu1 %v2057_v24 }
 0x21e   : > { %1652 = vmatmul.mubr.f32.gmra.mxu1 %v2062_v25 }
 0x21f   : > { %1654 = vmatprep.mubr.f32.mxu1 %v2065_v26 }
 0x222   : > { %1655 = vmatmul.mubr.f32.gmra.mxu1 %v2070_v27 }
 0x223   : > { %1657 = vmatprep.mubr.f32.mxu1 %v2073_v28 }
 0x226   : > { %1658 = vmatmul.mubr.f32.gmra.mxu1 %v2078_v29 }
 0x227   : > { %1660 = vmatprep.mubr.f32.mxu1 %v2081_v30 }
 0x22a   : > { %1661 = vmatmul.mubr.f32.gmra.mxu1 %v2086_v31 }
 0x22b   : > { %1663 = vmatprep.mubr.f32.mxu1 %v2089_v32 }
 0x22e   : > { %1664 = vmatmul.mubr.f32.gmra.mxu1 %v2094_v33 }
 0x22f   : > { %1733 = vmatprep.mubr.msk.f32.mxu1 %vm437_vm0, %v2107_v39 }
 0x232   : > { %1734 = vmatmul.mubr.msk.f32.vlgmr.msra.gmra.mxu1 %vm437_vm0, %v2103_v38 }
 0x233   : > { %1736 = vmatprep.mubr.msk.f32.mxu1 %vm437_vm0, %v2115_v41 }
 0x236   : > { %1737 = vmatmul.mubr.msk.f32.gmra.mxu1 %vm437_vm0, %v2111_v40 }
 0x237   : > { %1739 = vmatprep.mubr.msk.f32.mxu1 %vm437_vm0, %v2123_v43 }
 0x23a   : > { %1740 = vmatmul.mubr.msk.f32.gmra.mxu1 %vm437_vm0, %v2119_v42 }
 0x23b   : > { %1742 = vmatprep.mubr.msk.f32.mxu1 %vm437_vm0, %v2131_v45 }
 0x23e   : > { %1743 = vmatmul.mubr.msk.f32.gmra.mxu1 %vm437_vm0, %v2127_v44 }
 0x23f   : > { %1745 = vmatprep.mubr.msk.f32.mxu1 %vm437_vm0, %v2139_v47 }
 0x242   : > { %1746 = vmatmul.mubr.msk.f32.gmra.mxu1 %vm437_vm0, %v2135_v46 }
 0x243   : > { %1748 = vmatprep.mubr.msk.f32.mxu1 %vm437_vm0, %v2147_v49  ;;  %v2276_v49 = vld [vmem:[%s2413_s3 + $0x2] ss:$0 sm:$0xff] }
 0x246   : > { %1749 = vmatmul.mubr.msk.f32.gmra.mxu1 %vm437_vm0, %v2143_v48 }
 0x247   : > { %1751 = vmatprep.mubr.msk.f32.mxu1 %vm437_vm0, %v2155_v51 }
 0x24a   : > { %1752 = vmatmul.mubr.msk.f32.gmra.mxu1 %vm437_vm0, %v2151_v50 }
 0x2d2   : > { %v1644_v21 = vpop.f32.mrf.mxu1 }
 0x2d4   : > { %v753_v22 = vpop.f32.mrf.mxu1 }
 0x2d5   : > { %1698 = vmatprep.mubr.f32.mxu0 %v753_v22 }
 0x2d6   : > { %v1647_v23 = vpop.f32.mrf.mxu1  ;;  %1699 = vmatmul.mubr.f32.vlgmr.msra.gmra.mxu0 %v1644_v21 }
 0x2d7   : > { %1723 = vmatpush3.msra.mxu0 %v286_v58 }
 0x2d8   : > { %v763_v24 = vpop.f32.mrf.mxu1  ;;  %1724 = vmatprep.subr.mxu0 %v285_v16 }
 0x2d9   : > { %1701 = vmatprep.mubr.f32.mxu0 %v763_v24  ;;  %1725 = vmatpush3.msra.mxu0 %v285_v16 }
 0x2da   : > { %v1650_v25 = vpop.f32.mrf.mxu1  ;;  %1702 = vmatmul.mubr.f32.gmra.mxu0 %v1647_v23  ;;  %1726 = vmatprep.subr.mxu0 %v284_v35 }
 0x2db   : > { %1727 = vmatpush3.msra.mxu0 %v284_v35 }
 0x2dc   : > { %v773_v26 = vpop.f32.mrf.mxu1  ;;  %1728 = vmatprep.subr.mxu0 %v283_v13 }
 0x2dd   : > { %1704 = vmatprep.mubr.f32.mxu0 %v773_v26  ;;  %1729 = vmatpush3.msra.mxu0 %v283_v13 }
 0x2de   : > { %v1653_v27 = vpop.f32.mrf.mxu1  ;;  %1705 = vmatmul.mubr.f32.gmra.mxu0 %v1650_v25 }
 0x2e0   : > { %v783_v28 = vpop.f32.mrf.mxu1 }
 0x2e1   : > { %1707 = vmatprep.mubr.f32.mxu0 %v783_v28 }
 0x2e2   : > { %v1656_v29 = vpop.f32.mrf.mxu1  ;;  %1708 = vmatmul.mubr.f32.gmra.mxu0 %v1653_v27 }
 0x2e4   : > { %v793_v30 = vpop.f32.mrf.mxu1 }
 0x2e5   : > { %1710 = vmatprep.mubr.f32.mxu0 %v793_v30 }
 0x2e6   : > { %v1659_v31 = vpop.f32.mrf.mxu1  ;;  %1711 = vmatmul.mubr.f32.gmra.mxu0 %v1656_v29 }
 0x2e8   : > { %v803_v32 = vpop.f32.mrf.mxu1 }
 0x2e9   : > { %1713 = vmatprep.mubr.f32.mxu0 %v803_v32 }
 0x2ea   : > { %v1662_v33 = vpop.f32.mrf.mxu1  ;;  %1714 = vmatmul.mubr.f32.gmra.mxu0 %v1659_v31 }
 0x2ec   : > { %v813_v38 = vpop.f32.mrf.mxu1 }
 0x2ed   : > { %1716 = vmatprep.mubr.f32.mxu0 %v813_v38 }
 0x2ee   : > { %v1665_v39 = vpop.f32.mrf.mxu1  ;;  %1717 = vmatmul.mubr.f32.gmra.mxu0 %v1662_v33 }
 0x2f0   : > { %v823_v40 = vpop.f32.mrf.mxu1 }
 0x2f1   : > { %1719 = vmatprep.mubr.f32.mxu0 %v823_v40 }
 0x2f2   : > { %1720 = vmatmul.mubr.f32.gmra.mxu0 %v1665_v39  ;;  %v1735_v41 = vpop.f32.mrf.mxu1 }
 0x2f3   : > { %1730 = vmatprep.mubr.msk.f32.mxu0 %vm437_vm0, %v2099_v37 }
 0x2f4   : > { %v1109_v42 = vpop.f32.mrf.mxu1 }
 0x2f6   : > { %1731 = vmatmul.mubr.msk.f32.vlgmr.msra.gmra.mxu0 %vm437_vm0, %v2097_v36  ;;  %v1738_v43 = vpop.f32.mrf.mxu1  ;;  %v2282_v36 = vld [vmem:[%s2413_s3 + $0x3] ss:$0 sm:$0xff] }
 0x2f8   : > { %v1119_v44 = vpop.f32.mrf.mxu1 }
 0x2fa   : > { %v1741_v45 = vpop.f32.mrf.mxu1 }
 0x2fc   : > { %v1129_v48 = vpop.f32.mrf.mxu1 }
 0x2fe   : > { %v1744_v8 = vpop.f32.mrf.mxu1 }
 0x300   : > { %v1139_v61 = vpop.f32.mrf.mxu1 }
 0x302   : > { %v1747_v56 = vpop.f32.mrf.mxu1 }
 0x304   : > { %v1149_v24 = vpop.f32.mrf.mxu1 }
 0x396   : > { %v2269_v46 = vpop.f32.mrf.mxu0 }
 0x398   : > { %v2271_v47 = vpop.f32.mrf.mxu0 }
 0x39a   : > { %v1703_v37 = vpop.f32.mrf.mxu0 }
 0x39b   : > { %v984_v50 = vmul.f32 %v1703_v37, %v2276_v49 }
 0x39c   : > { %v908_v51 = vpop.f32.mrf.mxu0 }
 0x39d   : > { %v1004_v17 = vadd.f32 %v2282_v36, %v984_v50  ;;  %v983_v18 = vmul.f32 %v2276_v49, %v908_v51 }
 0x39e   : > { %v1706_v34 = vpop.f32.mrf.mxu0 }
 0x39f   : > { %v1020_v52 = vmax.f32 %v1004_v17, 0.0  ;;  %v1003_v10 = vadd.f32 %v2282_v36, %v983_v18  ;;  %v986_v53 = vmul.f32 %v1706_v34, %v2276_v49 }
 0x3a0   : > { %v918_v4 = vpop.f32.mrf.mxu0 }
 0x3a1   : > { %v1181_v55 = vadd.f32 %v1735_v41, %v1020_v52  ;;  %v1019_v57 = vmax.f32 %v1003_v10, 0.0  ;;  %v1006_v6 = vadd.f32 %v2282_v36, %v986_v53  ;;  %v985_v59 = vmul.f32 %v2276_v49, %v918_v4  ;;  %v1750_v41 = vpop.f32.mrf.mxu1 }
 0x3a2   : > { %v1709_v0 = vpop.f32.mrf.mxu0 }
 0x3a3   : > { %v1201_v63 = vadd.f32 %v2294_v54, %v1181_v55  ;;  %v1180_v1 = vadd.f32 %v1109_v42, %v1019_v57  ;;  %v1022_v2 = vmax.f32 %v1006_v6, 0.0  ;;  %v1005_v3 = vadd.f32 %v2282_v36, %v985_v59  ;;  %v1159_v52 = vpop.f32.mrf.mxu1 }
 0x3a4   : > { %v988_v5 = vmul.f32 %v1709_v0, %v2276_v49  ;;  %v928_v60 = vpop.f32.mrf.mxu0  ;;  %v982_v42 = vmul.f32 %v2269_v46, %v2276_v49 }
 0x3a5   : > { %1217 = vst [vmem:[%s2301_s12 + $0x18] sm:$0xff] %v1201_v63  ;;  %v1200_v7 = vadd.f32 %v2294_v54, %v1180_v1  ;;  %v1183_v9 = vadd.f32 %v1738_v43, %v1022_v2  ;;  %v1021_v62 = vmax.f32 %v1005_v3, 0.0  ;;  %v987_v11 = vmul.f32 %v2276_v49, %v928_v60  ;;  %v1753_v60 = vpop.f32.mrf.mxu1 }
 0x3a6   : > { %v1008_v12 = vadd.f32 %v2282_v36, %v988_v5  ;;  %v1712_v14 = vpop.f32.mrf.mxu0  ;;  %v981_v43 = vmul.f32 %v2276_v49, %v2271_v47  ;;  %v1002_v10 = vadd.f32 %v2282_v36, %v982_v42 }
 0x3a7   : > { %1216 = vst [vmem:[%s2301_s12 + $0x10] sm:$0xff] %v1200_v7  ;;  %v1203_v15 = vadd.f32 %v2294_v54, %v1183_v9  ;;  %v1182_v58 = vadd.f32 %v1119_v44, %v1021_v62  ;;  %v1007_v16 = vadd.f32 %v2282_v36, %v987_v11  ;;  %v990_v35 = vmul.f32 %v1712_v14, %v2276_v49 }
 0x3a8   : > { %v1024_v13 = vmax.f32 %v1008_v12, 0.0  ;;  %v938_v19 = vpop.f32.mrf.mxu0  ;;  %v1001_v53 = vadd.f32 %v2282_v36, %v981_v43  ;;  %v1018_v9 = vmax.f32 %v1002_v10, 0.0 }
 0x3a9   : > { %1219 = vst [vmem:[%s2301_s12 + $0x28] sm:$0xff] %v1203_v15  ;;  %v1202_v20 = vadd.f32 %v2294_v54, %v1182_v58  ;;  %v1023_v21 = vmax.f32 %v1007_v16, 0.0  ;;  %v1010_v22 = vadd.f32 %v2282_v36, %v990_v35  ;;  %v989_v23 = vmul.f32 %v2276_v49, %v938_v19 }
 0x3aa   : > { %v1185_v25 = vadd.f32 %v1741_v45, %v1024_v13  ;;  %v1715_v26 = vpop.f32.mrf.mxu0  ;;  %v1017_v11 = vmax.f32 %v1001_v53, 0.0 }
 0x3ab   : > { %1218 = vst [vmem:[%s2301_s12 + $0x20] sm:$0xff] %v1202_v20  ;;  %v1184_v27 = vadd.f32 %v1129_v48, %v1023_v21  ;;  %v1026_v28 = vmax.f32 %v1010_v22, 0.0  ;;  %v1009_v29 = vadd.f32 %v2282_v36, %v989_v23  ;;  %v992_v30 = vmul.f32 %v1715_v26, %v2276_v49  ;;  %v1169_v20 = vpop.f32.mrf.mxu1 }
 0x3ac   : > { %v1205_v31 = vadd.f32 %v2294_v54, %v1185_v25  ;;  %v948_v32 = vpop.f32.mrf.mxu0 }
 0x3ad   : > { %v1204_v33 = vadd.f32 %v2294_v54, %v1184_v27  ;;  %v1187_v38 = vadd.f32 %v1744_v8, %v1026_v28  ;;  %v1025_v39 = vmax.f32 %v1009_v29, 0.0  ;;  %v1012_v40 = vadd.f32 %v2282_v36, %v992_v30 }
 0x3ae   : > { %1221 = vst [vmem:[%s2301_s12 + $0x38] sm:$0xff] %v1205_v31  ;;  %v991_v44 = vmul.f32 %v2276_v49, %v948_v32  ;;  %v1718_v45 = vpop.f32.mrf.mxu0 }
 0x3af   : > { %1220 = vst [vmem:[%s2301_s12 + $0x30] sm:$0xff] %v1204_v33  ;;  %v1207_v48 = vadd.f32 %v2294_v54, %v1187_v38  ;;  %v1186_v37 = vadd.f32 %v1139_v61, %v1025_v39  ;;  %v1028_v50 = vmax.f32 %v1012_v40, 0.0  ;;  %v994_v51 = vmul.f32 %v1718_v45, %v2276_v49 }
 0x3b0   : > { %v1011_v17 = vadd.f32 %v2282_v36, %v991_v44  ;;  %v958_v18 = vpop.f32.mrf.mxu0 }
 0x3b1   : > { %1223 = vst [vmem:[%s2301_s12 + $0x48] sm:$0xff] %v1207_v48  ;;  %v1206_v46 = vadd.f32 %v2294_v54, %v1186_v37  ;;  %v1189_v47 = vadd.f32 %v1747_v56, %v1028_v50  ;;  %v1014_v8 = vadd.f32 %v2282_v36, %v994_v51  ;;  %v993_v34 = vmul.f32 %v2276_v49, %v958_v18 }
 0x3b2   : > { %v1027_v4 = vmax.f32 %v1011_v17, 0.0  ;;  %v1721_v55 = vpop.f32.mrf.mxu0 }
 0x3b3   : > { %1222 = vst [vmem:[%s2301_s12 + $0x40] sm:$0xff] %v1206_v46  ;;  %v1209_v57 = vadd.f32 %v2294_v54, %v1189_v47  ;;  %v1030_v6 = vmax.f32 %v1014_v8, 0.0  ;;  %v1013_v59 = vadd.f32 %v2282_v36, %v993_v34  ;;  %v996_v61 = vmul.f32 %v1721_v55, %v2276_v49 }
 0x3b4   : > { %v1188_v0 = vadd.f32 %v1149_v24, %v1027_v4  ;;  %v968_v63 = vpop.f32.mrf.mxu0 }
 0x3b5   : > { %1225 = vst [vmem:[%s2301_s12 + $0x58] sm:$0xff] %v1209_v57  ;;  %v1191_v1 = vadd.f32 %v1750_v41, %v1030_v6  ;;  %v1029_v2 = vmax.f32 %v1013_v59, 0.0  ;;  %v1016_v3 = vadd.f32 %v2282_v36, %v996_v61  ;;  %v995_v5 = vmul.f32 %v2276_v49, %v968_v63 }
 0x3b6   : > { %v1208_v7 = vadd.f32 %v2294_v54, %v1188_v0  ;;  %v1732_v62 = vpop.f32.mrf.mxu0 }
 0x3b7   : > { %v1211_v56 = vadd.f32 %v2294_v54, %v1191_v1  ;;  %v1190_v12 = vadd.f32 %v1159_v52, %v1029_v2  ;;  %v1032_v14 = vmax.f32 %v1016_v3, 0.0  ;;  %v1015_v15 = vadd.f32 %v2282_v36, %v995_v5 }
 0x3b8   : > { %1224 = vst [vmem:[%s2301_s12 + $0x50] sm:$0xff] %v1208_v7  ;;  %v1179_v58 = vadd.f32 %v1732_v62, %v1018_v9  ;;  %v1099_v16 = vpop.f32.mrf.mxu0 }
 0x3b9   : > { %1227 = vst [vmem:[%s2301_s12 + $0x68] sm:$0xff] %v1211_v56  ;;  %v1210_v49 = vadd.f32 %v2294_v54, %v1190_v12  ;;  %v1193_v35 = vadd.f32 %v1753_v60, %v1032_v14  ;;  %v1031_v13 = vmax.f32 %v1015_v15, 0.0  ;;  %v1178_v19 = vadd.f32 %v1099_v16, %v1017_v11 }
 0x3ba   : > { %v1199_v36 = vadd.f32 %v2294_v54, %v1179_v58 }
 0x3bb   : > { %1226 = vst [vmem:[%s2301_s12 + $0x60] sm:$0xff] %v1210_v49  ;;  %v1213_v21 = vadd.f32 %v2294_v54, %v1193_v35  ;;  %v1192_v22 = vadd.f32 %v1169_v20, %v1031_v13  ;;  %v1198_v23 = vadd.f32 %v2294_v54, %v1178_v19 }
 0x3bc   : > { %1215 = vst [vmem:[%s2301_s12 + $0x8] sm:$0xff] %v1199_v36 }
 0x3bd   : > { %1229 = vst [vmem:[%s2301_s12 + $0x78] sm:$0xff] %v1213_v21  ;;  %v1212_v24 = vadd.f32 %v2294_v54, %v1192_v22  ;;  %1214 = vst [vmem:[%s2301_s12] sm:$0xff] %v1198_v23 }
 0x3bf   : > { %1228 = vst [vmem:[%s2301_s12 + $0x70] sm:$0xff] %v1212_v24 }
 0x3c0   : > { %1855 = shalt.err (!%p1852_p0)
}
 0x3c1   : > { %s1856_s5 = scalar_lea.hbm %s2360_s23, 2048  ;;  %s1860_s8 = scalar_lea.hbm %s2414_s4, 4096 }
 0x3c2   : > { %p1857_p1 = scmp.ne.s32.totalorder %s2360_s23, %s1856_s5  ;;  %p1861_p4 = scmp.lt.s32.totalorder %s2360_s23, %s2414_s4 }
 0x3c3   : > { %p1862_p7 = scmp.lt.s32.totalorder %s1860_s8, %s1856_s5 }
 0x3c4   : > { %p1858_p2 = pnand %p1857_p1, %p1977_p5 }
 0x3c5   : > { %p1863_p8 = por %p1862_p7, %p1861_p4 }
 0x3c6   : > { %p1859_p3 = pneg %p1858_p2 }
 0x3c8   : > { %p1864_p6 = pnand %p1863_p8, %p1859_p3 }
 0x3ca   : > { %1867 = shalt.err (!%p1864_p6)
}
 0x3cb   : > { %s1912_s11 = smov 128   ;;  %s1913_s12 = smov 8  }
 0x3cc   : > { %1766 = dma.vmem_to_hbm [thread:$0]  (%p1977_p5), %s2362_s14, 2048, %s2360_s23, %s2370_s19, %s1912_s11, %s1912_s11, %s1913_s12  }
 0x3cd PF: > { %p1778_p9 = scmp.ge.s32.totalorder %s1906_s18, 2  ;;  %s1259_s13 = sand.u32 1, %s1894_s15  }
 0x3ce   : > { %p2418_p10 = scmp.ne.s32.totalorder %s2416_s26, 0  ;;  %s1260_s20 = scalar_lea.sflag [#allocation4], %s1259_s13 }
 0x3d0   : > { %p1773_p11 = pnand %p1778_p9, %p2418_p10 }
 0x3d2   : > { %p1774_p12 = pneg %p1773_p11 }
 0x3d4   : > { %1889 = dma.done.wait (%p1774_p12), %s1260_s20, 2048  }
 0x3d5   : > { %1891 = vsyncadd (%p1774_p12), %s1260_s20, 4294965248  ;;  %p15_p13 = scmp.ge.s32.totalorder %s1964_s21, 4   ;;  %s2419_s15 = smov %s1898_s16 }
 0x3d6   : > { %s2420_s16 = smov %s1902_s17  ;;  %s2421_s17 = smov %s1975_s24 }
 0x3d7   : > { %s2422_s18 = smov %s1964_s21  ;;  %17 = sbr.rel (!%p15_p13) target bundleno = 4 (0x4), region = 79 }
 0x3dc   :  { %1265 = vsyncpa [#allocation3], 1 }
 0x3dd   :  { %1267 = vsyncpa [#allocation3 + $0x1], 1 }
 0x3de   :  { %1268 = vsyncpa [#allocation4], 1 }
 0x3df   :  { %1270 = vsyncpa [#allocation4 + $0x1], 1 }

</bundles_post_ra>
